<compile_context>
chip_gen: v6e
topology: v6e:2x2x1
jax: 0.10.0
libtpu: 0.0.40
codegen_flags: <defaults>
</compile_context>

<pallas_src>
import functools

import jax
import jax.numpy as jnp
from jax.experimental import pallas as pl
from jax.experimental.pallas import tpu as pltpu


def _round_up(x, m):
    return ((x + m - 1) // m) * m


# ---------------------------------------------------------------------------
# Pallas kernel 1: single-pass matmul (bf16 in, f32 accumulate) + fused activation
# ---------------------------------------------------------------------------
def _matmul_act_kernel(a_ref, b_ref, o_ref, *, act):
    r = jnp.dot(a_ref[...], b_ref[...], preferred_element_type=jnp.float32)
    if act == "relu":
        r = jnp.maximum(r, 0.0)
    o_ref[...] = r.astype(o_ref.dtype)


def matmul_act(a, b_p, act="none", out_dtype=jnp.bfloat16):
    """act(a @ b) where b_p is a pre-padded / pre-cast bf16 matrix (K_pad, N_pad).

    a: (M, K) float, K <= K_pad.  Returns the padded (M_pad, N_pad) result in
    out_dtype; callers slice out the valid region.
    """
    M, K = a.shape
    K_pad, N_pad = b_p.shape
    assert K <= K_pad and K_pad % 128 == 0 and N_pad % 128 == 0

    # One grid axis over M only; full K resident in VMEM (no accumulator needed).
    tm = 512 if M > 512 else _round_up(M, 8)
    M_pad = _round_up(M, tm)

    a_p = jnp.zeros((M_pad, K_pad), jnp.bfloat16)
    a_p = a_p.at[:M, :K].set(a.astype(jnp.bfloat16))

    return pl.pallas_call(
        functools.partial(_matmul_act_kernel, act=act),
        out_shape=jax.ShapeDtypeStruct((M_pad, N_pad), out_dtype),
        grid_spec=pltpu.PrefetchScalarGridSpec(
            num_scalar_prefetch=0,
            grid=(M_pad // tm,),
            in_specs=[
                pl.BlockSpec((tm, K_pad), lambda i: (i, 0)),
                pl.BlockSpec((K_pad, N_pad), lambda i: (0, 0)),  # weight stays resident
            ],
            out_specs=pl.BlockSpec((tm, N_pad), lambda i: (i, 0)),
        ),
        compiler_params=pltpu.CompilerParams(
            dimension_semantics=("parallel",)),
    )(a_p, b_p)


# ---------------------------------------------------------------------------
# Pallas kernel 2: InstanceNorm2d (affine=False, biased var) + ReLU
# ---------------------------------------------------------------------------
def _instnorm_relu_kernel(x_ref, o_ref, *, eps):
    x = x_ref[...].astype(jnp.float32)                     # (1, HW, C_pad)
    mean = jnp.mean(x, axis=1, keepdims=True)
    var = jnp.mean(jnp.square(x - mean), axis=1, keepdims=True)   # biased, like PyTorch
    y = (x - mean) * jax.lax.rsqrt(var + eps)
    o_ref[...] = jnp.maximum(y, 0.0).astype(o_ref.dtype)


def instance_norm_relu(x, eps=1e-5):
    """x: (B, H, W, C) -> ReLU(InstanceNorm(x)), same shape and dtype."""
    B, H, W, C = x.shape
    HW = H * W
    C_pad = _round_up(C, 128)
    x_p = jnp.zeros((B, HW, C_pad), x.dtype).at[:, :, :C].set(x.reshape(B, HW, C))
    out = pl.pallas_call(
        functools.partial(_instnorm_relu_kernel, eps=eps),
        out_shape=jax.ShapeDtypeStruct((B, HW, C_pad), x.dtype),
        grid_spec=pltpu.PrefetchScalarGridSpec(
            num_scalar_prefetch=0,
            grid=(B,),
            in_specs=[pl.BlockSpec((1, HW, C_pad), lambda b: (b, 0, 0))],
            out_specs=pl.BlockSpec((1, HW, C_pad), lambda b: (b, 0, 0)),
        ),
        compiler_params=pltpu.CompilerParams(
            dimension_semantics=("parallel",)),
    )(x_p)
    return out[:, :, :C].reshape(B, H, W, C)


# ---------------------------------------------------------------------------
# Conv2d (bias=False) as im2col + Pallas matmul; activations stay NHWC
# ---------------------------------------------------------------------------
def _im2col_nhwc(x, k, stride):
    """x: (B, H, W, C) -> (B*Ho*Wo, k*k*C) with column order (ky, kx, c)."""
    # TODO(synk): patch extraction is pure data movement and stays in JAX glue.
    B, H, W, C = x.shape
    Ho = (H - k) // stride + 1
    Wo = (W - k) // stride + 1
    cols = []
    for dy in range(k):
        for dx in range(k):
            cols.append(x[:, dy:dy + stride * (Ho - 1) + 1:stride,
                             dx:dx + stride * (Wo - 1) + 1:stride, :])
    a = jnp.concatenate(cols, axis=-1)                     # (B, Ho, Wo, k*k*C)
    return a.reshape(B * Ho * Wo, k * k * C), Ho, Wo


def conv2d_nhwc(x, w_p, c_out, k, stride, act):
    """Conv2d (bias=False, pad=0). x NHWC; w_p pre-padded bf16 (K_pad, N_pad)."""
    B = x.shape[0]
    a, ho, wo = _im2col_nhwc(x, k, stride)
    out = matmul_act(a, w_p, act=act, out_dtype=jnp.bfloat16)
    return out[:B * ho * wo, :c_out].reshape(B, ho, wo, c_out)


# ---------------------------------------------------------------------------
# PatchGAN parameters (weights pre-converted to matmul layout ONCE) + forward
# ---------------------------------------------------------------------------
def _to_matmul_weight(w_pt):
    """PyTorch Conv2d weight (C_out, C_in, k, k) -> padded bf16 (K_pad, N_pad)
    with row ordering (ky, kx, c_in) matching _im2col_nhwc."""
    c_out, c_in, k, _ = w_pt.shape
    w = jnp.transpose(w_pt, (2, 3, 1, 0)).reshape(k * k * c_in, c_out)
    kp, npad = _round_up(k * k * c_in, 128), _round_up(c_out, 128)
    return jnp.zeros((kp, npad), jnp.bfloat16).at[:k * k * c_in, :c_out].set(
        w.astype(jnp.bfloat16))


def init_patchgan_params(key, depth=3, nf=64, k=3):
    channels = [3] + [nf * 2 ** i for i in range(depth)]
    params = {"convs": [], "k": k}
    for i in range(depth):
        key, sub = jax.random.split(key)
        c_in, c_out = channels[i], channels[i + 1]
        # PyTorch-layout weight, then converted once to padded bf16 matmul layout.
        w_pt = 0.05 * jax.random.normal(sub, (c_out, c_in, k, k), jnp.float32)
        params["convs"].append({"w_p": _to_matmul_weight(w_pt), "c_out": c_out})
    # classifier: nn.Linear(nf * 2**(depth-1), 1, bias=False); weight (1, C_feat)
    key, sub = jax.random.split(key)
    c_feat = channels[-1]
    w_cls = 0.05 * jax.random.normal(sub, (1, c_feat), jnp.float32)
    kp = _round_up(c_feat, 128)
    params["classifier_w_p"] = jnp.zeros((kp, 128), jnp.bfloat16).at[
        :c_feat, :1].set(w_cls.T.astype(jnp.bfloat16))
    return params


def patchgan_forward(params, img, input_dim):
    """img: (B, 3*input_dim*input_dim) -> (B,) logits (matches PatchGAN.forward)."""
    b = img.shape[0]
    x = img.reshape(b, 3, input_dim, input_dim)            # img.reshape(b,3,D,D) (NCHW)
    x = jnp.transpose(x, (0, 2, 3, 1))                     # NHWC once, kept throughout
    k = params["k"]
    for i, layer in enumerate(params["convs"]):
        if i == 0:
            # first block: normalize='none' -> conv + fused ReLU in the matmul kernel
            x = conv2d_nhwc(x, layer["w_p"], layer["c_out"], k, 2, act="relu")
        else:
            # later blocks: conv, then InstanceNorm + ReLU kernel
            x = conv2d_nhwc(x, layer["w_p"], layer["c_out"], k, 2, act="none")
            x = instance_norm_relu(x)
    feats = jnp.mean(x.astype(jnp.float32), axis=(1, 2))   # torch.mean(dim=(2,3)) -> (B,C)
    out = matmul_act(feats, params["classifier_w_p"], act="none",
                     out_dtype=jnp.float32)                # Linear(C, 1, bias=False)
    return out[:b, 0]                                      # .view(b)


if __name__ == "__main__":
    key = jax.random.PRNGKey(0)
    depth, nf, k, input_dim, batch = 3, 16, 3, 32, 2       # small shapes for a quick run

    pkey, ikey = jax.random.split(key)
    params = init_patchgan_params(pkey, depth=depth, nf=nf, k=k)
    img = jax.random.normal(ikey, (batch, 3 * input_dim * input_dim), jnp.float32)

    out = patchgan_forward(params, img, input_dim)
    out = jax.block_until_ready(out)

    assert out.shape == (batch,), out.shape
    assert bool(jnp.all(jnp.isfinite(out)))
    print("KERNEL_OK")
</pallas_src>

<mosaic_0001>
module attributes {stable_mosaic.version = 11 : i64} {
  func.func @_matmul_act_kernel(%arg0: i32, %arg1: memref<456x128xbf16, #tpu.memory_space<vmem>>, %arg2: memref<128x128xbf16, #tpu.memory_space<vmem>>, %arg3: memref<456x128xbf16, #tpu.memory_space<vmem>>) attributes {dimension_semantics = [#tpu.dimension_semantics<parallel>], iteration_bounds = array<i64: 1>, scalar_prefetch = 0 : i64, scratch_operands = 0 : i64, tpu.core_type = #tpu.core_type<tc>, window_params = [{transform_indices = @transform_0, window_bounds = array<i64: 456, 128>}, {pipeline_mode = #tpu.pipeline_mode<synchronous>, transform_indices = @transform_1, window_bounds = array<i64: 128, 128>}, {transform_indices = @transform_2, window_bounds = array<i64: 456, 128>}]} {
    %c0 = arith.constant 0 : index
    %c0_0 = arith.constant 0 : index
    %0 = vector.load %arg1[%c0, %c0_0] : memref<456x128xbf16, #tpu.memory_space<vmem>>, vector<456x128xbf16>
    %c0_1 = arith.constant 0 : index
    %c0_2 = arith.constant 0 : index
    %1 = vector.load %arg2[%c0_1, %c0_2] : memref<128x128xbf16, #tpu.memory_space<vmem>>, vector<128x128xbf16>
    %cst = arith.constant dense<0.000000e+00> : vector<456x128xf32>
    %2 = tpu.matmul %0, %1, %cst {dimension_numbers = #tpu.dot_dimension_numbers<[1], [0], [0], [1], [0, 0, 1, 1], [], []>} : vector<456x128xbf16>, vector<128x128xbf16>, vector<456x128xf32> -> vector<456x128xf32>
    %cst_3 = arith.constant 0.000000e+00 : f32
    %3 = vector.broadcast %cst_3 : f32 to vector<456x128xf32>
    %4 = arith.maximumf %2, %3 : vector<456x128xf32>
    %5 = arith.truncf %4 : vector<456x128xf32> to vector<456x128xbf16>
    %c0_4 = arith.constant 0 : index
    %c0_5 = arith.constant 0 : index
    %6 = vector.load %arg3[%c0_4, %c0_5] : memref<456x128xbf16, #tpu.memory_space<vmem>>, vector<456x128xbf16>
    tpu.vector_store %arg3[%c0_4, %c0_5], %5 {strides = array<i32>} : memref<456x128xbf16, #tpu.memory_space<vmem>>, vector<456x128xbf16>,
    return
  }
  func.func @transform_0(%arg0: i32) -> (i32, i32) {
    %c0_i32 = arith.constant 0 : i32
    %c0_i32_0 = arith.constant 0 : i32
    return %arg0, %c0_i32 : i32, i32
  }
  func.func @transform_1(%arg0: i32) -> (i32, i32) {
    %c0_i32 = arith.constant 0 : i32
    %c0_i32_0 = arith.constant 0 : i32
    %c0_i32_1 = arith.constant 0 : i32
    return %c0_i32, %c0_i32_0 : i32, i32
  }
  func.func @transform_2(%arg0: i32) -> (i32, i32) {
    %c0_i32 = arith.constant 0 : i32
    %c0_i32_0 = arith.constant 0 : i32
    return %arg0, %c0_i32 : i32, i32
  }
}

</mosaic_0001>

<bundles_post_ra>
// kernel: tpu_custom_call.1
= control target key start
LH: loop header
LB: loop body
LE: loop exit
PB: predicated region body
PF: predicated region fallthrough
CT: control target
= control target key end

     0   :  { %7 = vsyncpa [#allocation3], 0  ;;  %s1686_s0 = inlined_call_operand.hbm [shape: bf16[456,128], index: 0, kind: input, shape index: {}]   ;;  %s1687_s1 = inlined_call_operand.hbm [shape: bf16[128,128], index: 1, kind: input, shape index: {}]   ;;  %s1688_s2 = inlined_call_operand.hbm [shape: bf16[456,128], index: 2, kind: output, shape index: {}]  }
   0x1   :  { %8 = vsyncpa [#allocation6], 0 }
   0x2   :  { %9 = vsyncpa [#allocation4], 0  ;;  %s1572_s9 = smov [#allocation2]  }
   0x3   :  { %s15_s10 = sshll.u32 %s1572_s9, 4  ;;  %s16_s10 = int_to_ptr.vmem [resolvable:$true] %s15_s10 }
   0x4   :  { %s1514_s11 = scalar_lea.vmem %s16_s10, 3648  ;;  %p1519_p1 = scmp.lt.s32.totalorder %s16_s10, %s16_s10 }
   0x5   :  { %p1515_p0 = scmp.ne.s32.totalorder %s16_s10, %s1514_s11  ;;  %p1520_p2 = scmp.lt.s32.totalorder %s1514_s11, %s1514_s11 }
   0x7   :  { %p1521_p3 = por %p1520_p2, %p1519_p1 }
   0x9   :  { %p1522_p4 = pnand %p1521_p3, %p1515_p0 }
   0xb   :  { %1525 = shalt.err (!%p1522_p4)
}
   0xc   :  { %s1573_s12 = smov 64   ;;  %s1574_s13 = smov 4  }
   0xd   :  { %21 = dma.hbm_to_vmem [thread:$0]  %s1686_s0, 3648, %s16_s10, [#allocation3], %s1573_s12, %s1573_s12, %s1574_s13  }
   0xe   :  { %s1575_s16 = smov [#allocation5]  }
   0xf   :  { %s27_s17 = sshll.u32 %s1575_s16, 4  ;;  %s28_s17 = int_to_ptr.vmem [resolvable:$true] %s27_s17 }
  0x10   :  { %s1534_s18 = scalar_lea.vmem %s28_s17, 1024  ;;  %p1539_p6 = scmp.lt.s32.totalorder %s28_s17, %s28_s17 }
  0x11   :  { %p1535_p5 = scmp.ne.s32.totalorder %s28_s17, %s1534_s18  ;;  %p1540_p7 = scmp.lt.s32.totalorder %s1534_s18, %s1534_s18 }
  0x13   :  { %p1541_p8 = por %p1540_p7, %p1539_p6 }
  0x15   :  { %p1542_p9 = pnand %p1541_p8, %p1535_p5 }
  0x17   :  { %1545 = shalt.err (!%p1542_p9)
}
  0x18   :  { %33 = dma.hbm_to_vmem [thread:$0]  %s1687_s1, 1024, %s28_s17, [#allocation6], %s1573_s12, %s1573_s12, %s1574_s13  }
  0x19   :  { %1566 = dma.done.wait [#allocation3], 3648  }
  0x1a   :  { %1567 = vsyncadd [#allocation3], 4294963648 }
  0x1b   :  { %1568 = dma.done.wait [#allocation6], 1024  }
  0x1c   :  { %1569 = vsyncadd [#allocation6], 4294966272  ;;  %v1576_v0 = vmov 0.0   ;;  %vm1577_vm0 = vmmov 0   ;;  %v1469_v1 = vld [vmem:[#allocation5 + $0x38] sm:$0xff]   ;;  %v1470_v2 = vld [vmem:[#allocation5 + $0x30] sm:$0xff]  }
  0x1d   :  { %1314 = vmatprep.subr.bf16.mxu0 %v1576_v0  ;;  %1446 = vmatprep.subr.bf16.mxu1 %v1576_v0  ;;  %v1471_v3 = vld [vmem:[#allocation5 + $0x28] sm:$0xff]   ;;  %v1472_v4 = vld [vmem:[#allocation5 + $0x20] sm:$0xff]   ;;  %v1473_v5 = vld [vmem:[#allocation5 + $0x18] sm:$0xff]   ;;  %s1578_s0 = smov [#allocation7]  }
  0x1e   :  { %1330 = vmatprep.mubr.msk.bf16.mxu0 %vm1577_vm0, %v1576_v0  ;;  %1390 = vmatprep.mubr.msk.bf16.mxu1 %vm1577_vm0, %v1576_v0  ;;  %v1474_v6 = vld [vmem:[#allocation5 + $0x10] sm:$0xff]   ;;  %v1475_v7 = vld [vmem:[#allocation5 + $0x8] sm:$0xff]   ;;  %v1476_v8 = vld [vmem:[#allocation5] sm:$0xff]   ;;  %s946_s1 = sshll.u32 %s1578_s0, 4  ;;  %s947_s1 = int_to_ptr.vmem [resolvable:$true] %s946_s1 }
  0x1f   :  { %1315 = vmatpush3.bf16.msra.mxu0 %v1469_v1  ;;  %1454 = vmatpush3.bf16.msra.mxu1 %v1469_v1  ;;  %v1477_v9 = vld [vmem:[#allocation2] sm:$0xff]   ;;  %v1478_v10 = vld [vmem:[#allocation2 + $0x78] sm:$0xff]   ;;  %v1479_v11 = vld [vmem:[#allocation2 + $0x8] sm:$0xff]   ;;  %s1546_s21 = scalar_lea.vmem %s947_s1, 3648  ;;  %p1551_p11 = scmp.lt.s32.totalorder %s947_s1, %s947_s1 }
  0x20   :  { %1316 = vmatprep.subr.bf16.mxu0 %v1576_v0  ;;  %1447 = vmatprep.subr.bf16.mxu1 %v1576_v0  ;;  %v1480_v12 = vld [vmem:[#allocation2 + $0x80] sm:$0xff]   ;;  %v1481_v13 = vld [vmem:[#allocation2 + $0x10] sm:$0xff]   ;;  %v1482_v14 = vld [vmem:[#allocation2 + $0x88] sm:$0xff]   ;;  %p1547_p10 = scmp.ne.s32.totalorder %s947_s1, %s1546_s21  ;;  %p1552_p12 = scmp.lt.s32.totalorder %s1546_s21, %s1546_s21 }
  0x21   :  { %v1483_v15 = vld [vmem:[#allocation2 + $0x18] sm:$0xff]   ;;  %v1484_v16 = vld [vmem:[#allocation2 + $0x90] sm:$0xff]   ;;  %v1485_v17 = vld [vmem:[#allocation2 + $0x20] sm:$0xff]  }
  0x22   :  { %v1486_v18 = vld [vmem:[#allocation2 + $0x98] sm:$0xff]   ;;  %v1487_v19 = vld [vmem:[#allocation2 + $0x28] sm:$0xff]   ;;  %v1488_v20 = vld [vmem:[#allocation2 + $0xa0] sm:$0xff]   ;;  %p1553_p13 = por %p1552_p12, %p1551_p11 }
  0x23   :  { %1317 = vmatpush3.bf16.msra.mxu0 %v1470_v2  ;;  %1455 = vmatpush3.bf16.msra.mxu1 %v1470_v2  ;;  %v1489_v21 = vld [vmem:[#allocation2 + $0x30] sm:$0xff]   ;;  %v1490_v22 = vld [vmem:[#allocation2 + $0xa8] sm:$0xff]   ;;  %v1491_v23 = vld [vmem:[#allocation2 + $0x38] sm:$0xff]  }
  0x24   :  { %1318 = vmatprep.subr.bf16.mxu0 %v1576_v0  ;;  %1448 = vmatprep.subr.bf16.mxu1 %v1576_v0  ;;  %v1492_v24 = vld [vmem:[#allocation2 + $0xb0] sm:$0xff]   ;;  %v1493_v25 = vld [vmem:[#allocation2 + $0x40] sm:$0xff]   ;;  %v1494_v26 = vld [vmem:[#allocation2 + $0xb8] sm:$0xff]   ;;  %p1554_p0 = pnand %p1553_p13, %p1547_p10 }
  0x25   :  { %v1495_v27 = vld [vmem:[#allocation2 + $0x48] sm:$0xff]   ;;  %v1496_v28 = vld [vmem:[#allocation2 + $0xc0] sm:$0xff]   ;;  %v1497_v29 = vld [vmem:[#allocation2 + $0x50] sm:$0xff]  }
  0x26   :  { %v1498_v30 = vld [vmem:[#allocation2 + $0xc8] sm:$0xff]   ;;  %v1499_v31 = vld [vmem:[#allocation2 + $0x58] sm:$0xff]   ;;  %v1500_v32 = vld [vmem:[#allocation2 + $0xd0] sm:$0xff]  }
  0x27   :  { %1319 = vmatpush3.bf16.msra.mxu0 %v1471_v3  ;;  %1456 = vmatpush3.bf16.msra.mxu1 %v1471_v3  ;;  %v1501_v33 = vld [vmem:[#allocation2 + $0x60] sm:$0xff]   ;;  %v1502_v34 = vld [vmem:[#allocation2 + $0xd8] sm:$0xff]   ;;  %v1503_v35 = vld [vmem:[#allocation2 + $0x68] sm:$0xff]  }
  0x28   :  { %1320 = vmatprep.subr.bf16.mxu0 %v1576_v0  ;;  %1449 = vmatprep.subr.bf16.mxu1 %v1576_v0  ;;  %v1504_v36 = vld [vmem:[#allocation2 + $0xe0] ss:$0 sps:$4 sm:$0xff]   ;;  %v1505_v37 = vld [vmem:[#allocation2 + $0x70] sm:$0xff]  }
  0x2b   :  { %1321 = vmatpush3.bf16.msra.mxu0 %v1472_v4  ;;  %1457 = vmatpush3.bf16.msra.mxu1 %v1472_v4 }
  0x2c   :  { %1322 = vmatprep.subr.bf16.mxu0 %v1576_v0  ;;  %1450 = vmatprep.subr.bf16.mxu1 %v1576_v0 }
  0x2f   :  { %1323 = vmatpush3.bf16.msra.mxu0 %v1473_v5  ;;  %1458 = vmatpush3.bf16.msra.mxu1 %v1473_v5 }
  0x30   :  { %1324 = vmatprep.subr.bf16.mxu0 %v1576_v0  ;;  %1451 = vmatprep.subr.bf16.mxu1 %v1576_v0 }
  0x33   :  { %1325 = vmatpush3.bf16.msra.mxu0 %v1474_v6  ;;  %1459 = vmatpush3.bf16.msra.mxu1 %v1474_v6 }
  0x34   :  { %1326 = vmatprep.subr.bf16.mxu0 %v1576_v0  ;;  %1452 = vmatprep.subr.bf16.mxu1 %v1576_v0 }
  0x37   :  { %1327 = vmatpush3.bf16.msra.mxu0 %v1475_v7  ;;  %1460 = vmatpush3.bf16.msra.mxu1 %v1475_v7 }
  0x38   :  { %1328 = vmatprep.subr.bf16.mxu0 %v1576_v0  ;;  %1453 = vmatprep.subr.bf16.mxu1 %v1576_v0 }
  0x3b   :  { %1329 = vmatpush3.bf16.msra.mxu0 %v1476_v8  ;;  %1461 = vmatpush3.bf16.msra.mxu1 %v1476_v8 }
  0x3e   :  { %1331 = vmatmul.mubr.bf16.vlgmr.msra.gmra.mxu0 %v1477_v9  ;;  %1391 = vmatmul.mubr.bf16.vlgmr.msra.gmra.mxu1 %v1478_v10 }
  0x3f   :  { %1334 = vmatprep.mubr.msk.bf16.mxu0 %vm1577_vm0, %v1576_v0  ;;  %1394 = vmatprep.mubr.msk.bf16.mxu1 %vm1577_vm0, %v1576_v0 }
  0x46   :  { %1335 = vmatmul.mubr.bf16.gmra.mxu0 %v1479_v11  ;;  %1395 = vmatmul.mubr.bf16.gmra.mxu1 %v1480_v12 }
  0x47   :  { %1338 = vmatprep.mubr.msk.bf16.mxu0 %vm1577_vm0, %v1576_v0  ;;  %1398 = vmatprep.mubr.msk.bf16.mxu1 %vm1577_vm0, %v1576_v0 }
  0x4e   :  { %1339 = vmatmul.mubr.bf16.gmra.mxu0 %v1481_v13  ;;  %1399 = vmatmul.mubr.bf16.gmra.mxu1 %v1482_v14 }
  0x4f   :  { %1342 = vmatprep.mubr.msk.bf16.mxu0 %vm1577_vm0, %v1576_v0  ;;  %1402 = vmatprep.mubr.msk.bf16.mxu1 %vm1577_vm0, %v1576_v0 }
  0x56   :  { %1343 = vmatmul.mubr.bf16.gmra.mxu0 %v1483_v15  ;;  %1403 = vmatmul.mubr.bf16.gmra.mxu1 %v1484_v16 }
  0x57   :  { %1346 = vmatprep.mubr.msk.bf16.mxu0 %vm1577_vm0, %v1576_v0  ;;  %1406 = vmatprep.mubr.msk.bf16.mxu1 %vm1577_vm0, %v1576_v0 }
  0x5e   :  { %1347 = vmatmul.mubr.bf16.gmra.mxu0 %v1485_v17  ;;  %1407 = vmatmul.mubr.bf16.gmra.mxu1 %v1486_v18 }
  0x5f   :  { %1350 = vmatprep.mubr.msk.bf16.mxu0 %vm1577_vm0, %v1576_v0  ;;  %1410 = vmatprep.mubr.msk.bf16.mxu1 %vm1577_vm0, %v1576_v0 }
  0x66   :  { %1351 = vmatmul.mubr.bf16.gmra.mxu0 %v1487_v19  ;;  %1411 = vmatmul.mubr.bf16.gmra.mxu1 %v1488_v20 }
  0x67   :  { %1354 = vmatprep.mubr.msk.bf16.mxu0 %vm1577_vm0, %v1576_v0  ;;  %1414 = vmatprep.mubr.msk.bf16.mxu1 %vm1577_vm0, %v1576_v0 }
  0x6e   :  { %1355 = vmatmul.mubr.bf16.gmra.mxu0 %v1489_v21  ;;  %1415 = vmatmul.mubr.bf16.gmra.mxu1 %v1490_v22 }
  0x6f   :  { %1358 = vmatprep.mubr.msk.bf16.mxu0 %vm1577_vm0, %v1576_v0  ;;  %1418 = vmatprep.mubr.msk.bf16.mxu1 %vm1577_vm0, %v1576_v0 }
  0x76   :  { %1359 = vmatmul.mubr.bf16.gmra.mxu0 %v1491_v23  ;;  %1419 = vmatmul.mubr.bf16.gmra.mxu1 %v1492_v24 }
  0x77   :  { %1362 = vmatprep.mubr.msk.bf16.mxu0 %vm1577_vm0, %v1576_v0  ;;  %1422 = vmatprep.mubr.msk.bf16.mxu1 %vm1577_vm0, %v1576_v0 }
  0x7e   :  { %1363 = vmatmul.mubr.bf16.gmra.mxu0 %v1493_v25  ;;  %1423 = vmatmul.mubr.bf16.gmra.mxu1 %v1494_v26 }
  0x7f   :  { %1366 = vmatprep.mubr.msk.bf16.mxu0 %vm1577_vm0, %v1576_v0  ;;  %1426 = vmatprep.mubr.msk.bf16.mxu1 %vm1577_vm0, %v1576_v0 }
  0x86   :  { %1367 = vmatmul.mubr.bf16.gmra.mxu0 %v1495_v27  ;;  %1427 = vmatmul.mubr.bf16.gmra.mxu1 %v1496_v28 }
  0x87   :  { %1370 = vmatprep.mubr.msk.bf16.mxu0 %vm1577_vm0, %v1576_v0  ;;  %1430 = vmatprep.mubr.msk.bf16.mxu1 %vm1577_vm0, %v1576_v0 }
  0x8e   :  { %1371 = vmatmul.mubr.bf16.gmra.mxu0 %v1497_v29  ;;  %1431 = vmatmul.mubr.bf16.gmra.mxu1 %v1498_v30 }
  0x8f   :  { %1374 = vmatprep.mubr.msk.bf16.mxu0 %vm1577_vm0, %v1576_v0  ;;  %1434 = vmatprep.mubr.msk.bf16.mxu1 %vm1577_vm0, %v1576_v0 }
  0x96   :  { %1375 = vmatmul.mubr.bf16.gmra.mxu0 %v1499_v31  ;;  %1435 = vmatmul.mubr.bf16.gmra.mxu1 %v1500_v32 }
  0x97   :  { %1378 = vmatprep.mubr.msk.bf16.mxu0 %vm1577_vm0, %v1576_v0  ;;  %1438 = vmatprep.mubr.msk.bf16.mxu1 %vm1577_vm0, %v1576_v0 }
  0x9e   :  { %1379 = vmatmul.mubr.bf16.gmra.mxu0 %v1501_v33  ;;  %1439 = vmatmul.mubr.bf16.gmra.mxu1 %v1502_v34 }
  0x9f   :  { %1382 = vmatprep.mubr.msk.bf16.mxu0 %vm1577_vm0, %v1576_v0  ;;  %1442 = vmatprep.mubr.msk.bf16.mxu1 %vm1577_vm0, %v1576_v0 }
  0xa6   :  { %1383 = vmatmul.mubr.bf16.gmra.mxu0 %v1503_v35  ;;  %1443 = vmatmul.mubr.bf16.gmra.mxu1 %v1504_v36 }
  0xa7   :  { %1386 = vmatprep.mubr.msk.bf16.mxu0 %vm1577_vm0, %v1576_v0 }
  0xae   :  { %1387 = vmatmul.mubr.bf16.gmra.mxu0 %v1505_v37 }
  0xfe   :  { %v368_v38 = vpop.f32.mrf.mxu0  ;;  %v488_v39 = vpop.f32.mrf.mxu1 }
  0xff   :  { %v628_v42 = vmax.f32 %v488_v39, 0.0  ;;  %v598_v45 = vmax.f32 %v368_v38, 0.0 }
 0x100   :  { %v1332_v40 = vpop.f32.mrf.mxu0  ;;  %v1392_v41 = vpop.f32.mrf.mxu1 }
 0x102   :  { %v371_v43 = vpop.f32.mrf.mxu0  ;;  %v491_v44 = vpop.f32.mrf.mxu1 }
 0x103   :  { %v599_v46 = vmax.f32 %v371_v43, 0.0  ;;  %v629_v47 = vmax.f32 %v491_v44, 0.0 }
 0x104   :  { %v1333_v48 = vpop.f32.mrf.mxu0  ;;  %v1393_v49 = vpop.f32.mrf.mxu1 }
 0x105   :  { %v1113_v50 = vpack.c.bf16 %v599_v46, %v598_v45  ;;  %v1188_v51 = vpack.c.bf16 %v629_v47, %v628_v42 }
 0x106   :  { %v376_v52 = vpop.f32.mrf.mxu0  ;;  %v496_v53 = vpop.f32.mrf.mxu1 }
 0x107   :  { %1114 = vst [vmem:[#allocation7] sm:$0xff] %v1113_v50   ;;  %1264 = vst [vmem:[#allocation7 + $0x78] sm:$0xff] %v1188_v51   ;;  %v630_v56 = vmax.f32 %v496_v53, 0.0  ;;  %v600_v59 = vmax.f32 %v376_v52, 0.0 }
 0x108   :  { %v1336_v54 = vpop.f32.mrf.mxu0  ;;  %v1396_v55 = vpop.f32.mrf.mxu1 }
 0x10a   :  { %v379_v57 = vpop.f32.mrf.mxu0  ;;  %v499_v58 = vpop.f32.mrf.mxu1 }
 0x10b   :  { %v601_v60 = vmax.f32 %v379_v57, 0.0  ;;  %v631_v61 = vmax.f32 %v499_v58, 0.0 }
 0x10c   :  { %v1337_v62 = vpop.f32.mrf.mxu0  ;;  %v1397_v63 = vpop.f32.mrf.mxu1 }
 0x10d   :  { %v1118_v0 = vpack.c.bf16 %v601_v60, %v600_v59  ;;  %v1193_v1 = vpack.c.bf16 %v631_v61, %v630_v56 }
 0x10e   :  { %v384_v2 = vpop.f32.mrf.mxu0  ;;  %v504_v3 = vpop.f32.mrf.mxu1 }
 0x10f   :  { %1250 = vst [vmem:[#allocation7 + $0x8] sm:$0xff] %v1118_v0   ;;  %1265 = vst [vmem:[#allocation7 + $0x80] sm:$0xff] %v1193_v1   ;;  %v632_v6 = vmax.f32 %v504_v3, 0.0  ;;  %v602_v9 = vmax.f32 %v384_v2, 0.0 }
 0x110   :  { %v1340_v4 = vpop.f32.mrf.mxu0  ;;  %v1400_v5 = vpop.f32.mrf.mxu1 }
 0x112   :  { %v387_v7 = vpop.f32.mrf.mxu0  ;;  %v507_v8 = vpop.f32.mrf.mxu1 }
 0x113   :  { %v603_v10 = vmax.f32 %v387_v7, 0.0  ;;  %v633_v11 = vmax.f32 %v507_v8, 0.0 }
 0x114   :  { %v1341_v12 = vpop.f32.mrf.mxu0  ;;  %v1401_v13 = vpop.f32.mrf.mxu1 }
 0x115   :  { %v1123_v14 = vpack.c.bf16 %v603_v10, %v602_v9  ;;  %v1198_v15 = vpack.c.bf16 %v633_v11, %v632_v6 }
 0x116   :  { %v392_v16 = vpop.f32.mrf.mxu0  ;;  %v512_v17 = vpop.f32.mrf.mxu1 }
 0x117   :  { %1251 = vst [vmem:[#allocation7 + $0x10] sm:$0xff] %v1123_v14   ;;  %1266 = vst [vmem:[#allocation7 + $0x88] sm:$0xff] %v1198_v15   ;;  %v634_v20 = vmax.f32 %v512_v17, 0.0  ;;  %v604_v23 = vmax.f32 %v392_v16, 0.0 }
 0x118   :  { %v1344_v18 = vpop.f32.mrf.mxu0  ;;  %v1404_v19 = vpop.f32.mrf.mxu1 }
 0x11a   :  { %v395_v21 = vpop.f32.mrf.mxu0  ;;  %v515_v22 = vpop.f32.mrf.mxu1 }
 0x11b   :  { %v605_v24 = vmax.f32 %v395_v21, 0.0  ;;  %v635_v25 = vmax.f32 %v515_v22, 0.0 }
 0x11c   :  { %v1345_v26 = vpop.f32.mrf.mxu0  ;;  %v1405_v27 = vpop.f32.mrf.mxu1 }
 0x11d   :  { %v1128_v28 = vpack.c.bf16 %v605_v24, %v604_v23  ;;  %v1203_v29 = vpack.c.bf16 %v635_v25, %v634_v20 }
 0x11e   :  { %v400_v30 = vpop.f32.mrf.mxu0  ;;  %v520_v31 = vpop.f32.mrf.mxu1 }
 0x11f   :  { %1252 = vst [vmem:[#allocation7 + $0x18] sm:$0xff] %v1128_v28   ;;  %1267 = vst [vmem:[#allocation7 + $0x90] sm:$0xff] %v1203_v29   ;;  %v636_v34 = vmax.f32 %v520_v31, 0.0  ;;  %v606_v37 = vmax.f32 %v400_v30, 0.0 }
 0x120   :  { %v1348_v32 = vpop.f32.mrf.mxu0  ;;  %v1408_v33 = vpop.f32.mrf.mxu1 }
 0x122   :  { %v403_v35 = vpop.f32.mrf.mxu0  ;;  %v523_v36 = vpop.f32.mrf.mxu1 }
 0x123   :  { %v607_v38 = vmax.f32 %v403_v35, 0.0  ;;  %v637_v39 = vmax.f32 %v523_v36, 0.0 }
 0x124   :  { %v1349_v40 = vpop.f32.mrf.mxu0  ;;  %v1409_v41 = vpop.f32.mrf.mxu1 }
 0x125   :  { %v1133_v42 = vpack.c.bf16 %v607_v38, %v606_v37  ;;  %v1208_v43 = vpack.c.bf16 %v637_v39, %v636_v34 }
 0x126   :  { %v408_v44 = vpop.f32.mrf.mxu0  ;;  %v528_v45 = vpop.f32.mrf.mxu1 }
 0x127   :  { %1253 = vst [vmem:[#allocation7 + $0x20] sm:$0xff] %v1133_v42   ;;  %1268 = vst [vmem:[#allocation7 + $0x98] sm:$0xff] %v1208_v43   ;;  %v638_v48 = vmax.f32 %v528_v45, 0.0  ;;  %v608_v51 = vmax.f32 %v408_v44, 0.0 }
 0x128   :  { %v1352_v46 = vpop.f32.mrf.mxu0  ;;  %v1412_v47 = vpop.f32.mrf.mxu1 }
 0x12a   :  { %v411_v49 = vpop.f32.mrf.mxu0  ;;  %v531_v50 = vpop.f32.mrf.mxu1 }
 0x12b   :  { %v609_v52 = vmax.f32 %v411_v49, 0.0  ;;  %v639_v53 = vmax.f32 %v531_v50, 0.0 }
 0x12c   :  { %v1353_v54 = vpop.f32.mrf.mxu0  ;;  %v1413_v55 = vpop.f32.mrf.mxu1 }
 0x12d   :  { %v1138_v56 = vpack.c.bf16 %v609_v52, %v608_v51  ;;  %v1213_v57 = vpack.c.bf16 %v639_v53, %v638_v48 }
 0x12e   :  { %v416_v58 = vpop.f32.mrf.mxu0  ;;  %v536_v59 = vpop.f32.mrf.mxu1 }
 0x12f   :  { %1254 = vst [vmem:[#allocation7 + $0x28] sm:$0xff] %v1138_v56   ;;  %1269 = vst [vmem:[#allocation7 + $0xa0] sm:$0xff] %v1213_v57   ;;  %v640_v62 = vmax.f32 %v536_v59, 0.0  ;;  %v610_v1 = vmax.f32 %v416_v58, 0.0 }
 0x130   :  { %v1356_v60 = vpop.f32.mrf.mxu0  ;;  %v1416_v61 = vpop.f32.mrf.mxu1 }
 0x132   :  { %v419_v63 = vpop.f32.mrf.mxu0  ;;  %v539_v0 = vpop.f32.mrf.mxu1 }
 0x133   :  { %v611_v2 = vmax.f32 %v419_v63, 0.0  ;;  %v641_v3 = vmax.f32 %v539_v0, 0.0 }
 0x134   :  { %v1357_v4 = vpop.f32.mrf.mxu0  ;;  %v1417_v5 = vpop.f32.mrf.mxu1 }
 0x135   :  { %v1143_v6 = vpack.c.bf16 %v611_v2, %v610_v1  ;;  %v1218_v7 = vpack.c.bf16 %v641_v3, %v640_v62 }
 0x136   :  { %v424_v8 = vpop.f32.mrf.mxu0  ;;  %v544_v9 = vpop.f32.mrf.mxu1 }
 0x137   :  { %1255 = vst [vmem:[#allocation7 + $0x30] sm:$0xff] %v1143_v6   ;;  %1270 = vst [vmem:[#allocation7 + $0xa8] sm:$0xff] %v1218_v7   ;;  %v642_v12 = vmax.f32 %v544_v9, 0.0  ;;  %v612_v15 = vmax.f32 %v424_v8, 0.0 }
 0x138   :  { %v1360_v10 = vpop.f32.mrf.mxu0  ;;  %v1420_v11 = vpop.f32.mrf.mxu1 }
 0x13a   :  { %v427_v13 = vpop.f32.mrf.mxu0  ;;  %v547_v14 = vpop.f32.mrf.mxu1 }
 0x13b   :  { %v613_v16 = vmax.f32 %v427_v13, 0.0  ;;  %v643_v17 = vmax.f32 %v547_v14, 0.0 }
 0x13c   :  { %v1361_v18 = vpop.f32.mrf.mxu0  ;;  %v1421_v19 = vpop.f32.mrf.mxu1 }
 0x13d   :  { %v1148_v20 = vpack.c.bf16 %v613_v16, %v612_v15  ;;  %v1223_v21 = vpack.c.bf16 %v643_v17, %v642_v12 }
 0x13e   :  { %v432_v22 = vpop.f32.mrf.mxu0  ;;  %v552_v23 = vpop.f32.mrf.mxu1 }
 0x13f   :  { %1256 = vst [vmem:[#allocation7 + $0x38] sm:$0xff] %v1148_v20   ;;  %1271 = vst [vmem:[#allocation7 + $0xb0] sm:$0xff] %v1223_v21   ;;  %v644_v26 = vmax.f32 %v552_v23, 0.0  ;;  %v614_v29 = vmax.f32 %v432_v22, 0.0 }
 0x140   :  { %v1364_v24 = vpop.f32.mrf.mxu0  ;;  %v1424_v25 = vpop.f32.mrf.mxu1 }
 0x142   :  { %v435_v27 = vpop.f32.mrf.mxu0  ;;  %v555_v28 = vpop.f32.mrf.mxu1 }
 0x143   :  { %v615_v30 = vmax.f32 %v435_v27, 0.0  ;;  %v645_v31 = vmax.f32 %v555_v28, 0.0 }
 0x144   :  { %v1365_v32 = vpop.f32.mrf.mxu0  ;;  %v1425_v33 = vpop.f32.mrf.mxu1 }
 0x145   :  { %v1153_v34 = vpack.c.bf16 %v615_v30, %v614_v29  ;;  %v1228_v35 = vpack.c.bf16 %v645_v31, %v644_v26 }
 0x146   :  { %v440_v36 = vpop.f32.mrf.mxu0  ;;  %v560_v37 = vpop.f32.mrf.mxu1 }
 0x147   :  { %1257 = vst [vmem:[#allocation7 + $0x40] sm:$0xff] %v1153_v34   ;;  %1272 = vst [vmem:[#allocation7 + $0xb8] sm:$0xff] %v1228_v35   ;;  %v646_v40 = vmax.f32 %v560_v37, 0.0  ;;  %v616_v43 = vmax.f32 %v440_v36, 0.0 }
 0x148   :  { %v1368_v38 = vpop.f32.mrf.mxu0  ;;  %v1428_v39 = vpop.f32.mrf.mxu1 }
 0x14a   :  { %v443_v41 = vpop.f32.mrf.mxu0  ;;  %v563_v42 = vpop.f32.mrf.mxu1 }
 0x14b   :  { %v617_v44 = vmax.f32 %v443_v41, 0.0  ;;  %v647_v45 = vmax.f32 %v563_v42, 0.0 }
 0x14c   :  { %v1369_v46 = vpop.f32.mrf.mxu0  ;;  %v1429_v47 = vpop.f32.mrf.mxu1 }
 0x14d   :  { %v1158_v48 = vpack.c.bf16 %v617_v44, %v616_v43  ;;  %v1233_v49 = vpack.c.bf16 %v647_v45, %v646_v40 }
 0x14e   :  { %v448_v50 = vpop.f32.mrf.mxu0  ;;  %v568_v51 = vpop.f32.mrf.mxu1 }
 0x14f   :  { %1258 = vst [vmem:[#allocation7 + $0x48] sm:$0xff] %v1158_v48   ;;  %1273 = vst [vmem:[#allocation7 + $0xc0] sm:$0xff] %v1233_v49   ;;  %v648_v54 = vmax.f32 %v568_v51, 0.0  ;;  %v618_v57 = vmax.f32 %v448_v50, 0.0 }
 0x150   :  { %v1372_v52 = vpop.f32.mrf.mxu0  ;;  %v1432_v53 = vpop.f32.mrf.mxu1 }
 0x152   :  { %v451_v55 = vpop.f32.mrf.mxu0  ;;  %v571_v56 = vpop.f32.mrf.mxu1 }
 0x153   :  { %v619_v58 = vmax.f32 %v451_v55, 0.0  ;;  %v649_v59 = vmax.f32 %v571_v56, 0.0 }
 0x154   :  { %v1373_v60 = vpop.f32.mrf.mxu0  ;;  %v1433_v61 = vpop.f32.mrf.mxu1 }
 0x155   :  { %v1163_v62 = vpack.c.bf16 %v619_v58, %v618_v57  ;;  %v1238_v63 = vpack.c.bf16 %v649_v59, %v648_v54 }
 0x156   :  { %v456_v0 = vpop.f32.mrf.mxu0  ;;  %v576_v1 = vpop.f32.mrf.mxu1 }
 0x157   :  { %1259 = vst [vmem:[#allocation7 + $0x50] sm:$0xff] %v1163_v62   ;;  %1274 = vst [vmem:[#allocation7 + $0xc8] sm:$0xff] %v1238_v63   ;;  %v650_v4 = vmax.f32 %v576_v1, 0.0  ;;  %v620_v7 = vmax.f32 %v456_v0, 0.0 }
 0x158   :  { %v1376_v2 = vpop.f32.mrf.mxu0  ;;  %v1436_v3 = vpop.f32.mrf.mxu1 }
 0x15a   :  { %v459_v5 = vpop.f32.mrf.mxu0  ;;  %v579_v6 = vpop.f32.mrf.mxu1 }
 0x15b   :  { %v621_v8 = vmax.f32 %v459_v5, 0.0  ;;  %v651_v9 = vmax.f32 %v579_v6, 0.0 }
 0x15c   :  { %v1377_v10 = vpop.f32.mrf.mxu0  ;;  %v1437_v11 = vpop.f32.mrf.mxu1 }
 0x15d   :  { %v1168_v12 = vpack.c.bf16 %v621_v8, %v620_v7  ;;  %v1243_v13 = vpack.c.bf16 %v651_v9, %v650_v4 }
 0x15e   :  { %v464_v14 = vpop.f32.mrf.mxu0  ;;  %v584_v15 = vpop.f32.mrf.mxu1 }
 0x15f   :  { %1260 = vst [vmem:[#allocation7 + $0x58] sm:$0xff] %v1168_v12   ;;  %1275 = vst [vmem:[#allocation7 + $0xd0] sm:$0xff] %v1243_v13   ;;  %v652_v18 = vmax.f32 %v584_v15, 0.0  ;;  %v622_v21 = vmax.f32 %v464_v14, 0.0 }
 0x160   :  { %v1380_v16 = vpop.f32.mrf.mxu0  ;;  %v1440_v17 = vpop.f32.mrf.mxu1 }
 0x162   :  { %v467_v19 = vpop.f32.mrf.mxu0  ;;  %v587_v20 = vpop.f32.mrf.mxu1 }
 0x163   :  { %v623_v22 = vmax.f32 %v467_v19, 0.0  ;;  %v653_v23 = vmax.f32 %v587_v20, 0.0 }
 0x164   :  { %v1381_v24 = vpop.f32.mrf.mxu0  ;;  %v1441_v25 = vpop.f32.mrf.mxu1 }
 0x165   :  { %v1173_v26 = vpack.c.bf16 %v623_v22, %v622_v21  ;;  %v1248_v27 = vpack.c.bf16 %v653_v23, %v652_v18 }
 0x166   :  { %v472_v28 = vpop.f32.mrf.mxu0  ;;  %v592_v29 = vpop.f32.mrf.mxu1 }
 0x167   :  { %1261 = vst [vmem:[#allocation7 + $0x60] sm:$0xff] %v1173_v26   ;;  %1276 = vst [vmem:[#allocation7 + $0xd8] sm:$0xff] %v1248_v27   ;;  %v654_v30 = vmax.f32 %v592_v29, 0.0  ;;  %v624_v36 = vmax.f32 %v472_v28, 0.0 }
 0x168   :  { %v1384_v31 = vpop.f32.mrf.mxu0  ;;  %v1444_v32 = vpop.f32.mrf.mxu1 }
 0x169   :  { %v1109_v33 = vpack.c.bf16 %v654_v30, %v654_v30 }
 0x16a   :  { %v475_v34 = vpop.f32.mrf.mxu0  ;;  %v595_v35 = vpop.f32.mrf.mxu1 }
 0x16b   :  { %v625_v37 = vmax.f32 %v475_v34, 0.0  ;;  %940 = vst [vmem:[#allocation7 + $0xe0] sm:$0xf] %v1109_v33 }
 0x16c   :  { %v1385_v38 = vpop.f32.mrf.mxu0  ;;  %v1445_v39 = vpop.f32.mrf.mxu1 }
 0x16d   :  { %v1178_v40 = vpack.c.bf16 %v625_v37, %v624_v36 }
 0x16e   :  { %v480_v41 = vpop.f32.mrf.mxu0 }
 0x16f   :  { %1262 = vst [vmem:[#allocation7 + $0x68] sm:$0xff] %v1178_v40   ;;  %v626_v44 = vmax.f32 %v480_v41, 0.0 }
 0x170   :  { %v1388_v42 = vpop.f32.mrf.mxu0 }
 0x172   :  { %v483_v43 = vpop.f32.mrf.mxu0 }
 0x173   :  { %v627_v45 = vmax.f32 %v483_v43, 0.0 }
 0x174   :  { %v1389_v46 = vpop.f32.mrf.mxu0 }
 0x175   :  { %v1183_v47 = vpack.c.bf16 %v627_v45, %v626_v44 }
 0x177   :  { %1263 = vst [vmem:[#allocation7 + $0x70] sm:$0xff] %v1183_v47  }
 0x178   :  { %1557 = shalt.err (!%p1554_p0)
}
 0x179   :  { %952 = dma.vmem_to_hbm [thread:$0]  %s947_s1, 3648, %s1688_s2, [#allocation4], %s1573_s12, %s1573_s12, %s1574_s13  }
 0x17a   :  { %1570 = dma.done.wait [#allocation4], 3648  }
 0x17b   :  { %1571 = vsyncadd [#allocation4], 4294963648 }
 0x17c   :  { %956 = vsyncpa [#allocation3], 1 }
 0x17d   :  { %957 = vsyncpa [#allocation6], 1 }
 0x17e   :  { %958 = vsyncpa [#allocation4], 1 }

</bundles_post_ra>
